<compile_context>
chip_gen: v7x
topology: tpu7x:2x2x1
jax: 0.10.0
libtpu: 0.0.40
codegen_flags: <defaults>
</compile_context>

<pallas_src>
import functools

import jax
import jax.numpy as jnp
from jax.experimental import pallas as pl
from jax.experimental.pallas import tpu as pltpu

LANE = 128


def _round_up(n, m):
    return ((n + m - 1) // m) * m


def _pad2(a, shape):
    return jnp.pad(a, [(0, t - s) for s, t in zip(a.shape, shape)])


def _mlp_prng_kernel(seed_ref, x_ref, w1_ref, b1_ref, w2_ref, b2_ref,
                     w3_ref, b3_ref, o_ref, *, dropout):
    """One batch tile of fc1->ReLU->drop->fc2->ReLU->drop->fc3.

    Dropout (p=0.5, scale 2.0) masks are drawn on-chip -> zero mask DMA.
    """
    if dropout:
        # Distinct PRNG stream per batch tile.
        pltpu.prng_seed(seed_ref[0] + pl.program_id(0))

    # fc1 + ReLU (+ dropout)
    h1 = jnp.dot(x_ref[...], w1_ref[...],
                 preferred_element_type=jnp.float32) + b1_ref[...]
    h1 = jnp.maximum(h1, 0.0)
    if dropout:
        bits = pltpu.prng_random_bits(h1.shape)
        h1 = jnp.where((bits & 1) == 1, h1 * 2.0, 0.0)  # keep w.p. 0.5, 1/(1-p)=2

    # fc2 + ReLU (+ dropout)
    h2 = jnp.dot(h1.astype(jnp.bfloat16), w2_ref[...],
                 preferred_element_type=jnp.float32) + b2_ref[...]
    h2 = jnp.maximum(h2, 0.0)
    if dropout:
        bits = pltpu.prng_random_bits(h2.shape)
        h2 = jnp.where((bits & 1) == 1, h2 * 2.0, 0.0)

    # fc3 (logits) — lane-dense (128-padded) store
    o_ref[...] = jnp.dot(h2.astype(jnp.bfloat16), w3_ref[...],
                         preferred_element_type=jnp.float32) + b3_ref[...]


def _mlp_mask_kernel(x_ref, w1_ref, b1_ref, m1_ref, w2_ref, b2_ref, m2_ref,
                     w3_ref, b3_ref, o_ref):
    """Fallback (no HW PRNG): pre-drawn bf16 {0.0, 2.0} dropout masks."""
    h1 = jnp.dot(x_ref[...], w1_ref[...],
                 preferred_element_type=jnp.float32) + b1_ref[...]
    h1 = jnp.maximum(h1, 0.0) * m1_ref[...].astype(jnp.float32)
    h2 = jnp.dot(h1.astype(jnp.bfloat16), w2_ref[...],
                 preferred_element_type=jnp.float32) + b2_ref[...]
    h2 = jnp.maximum(h2, 0.0) * m2_ref[...].astype(jnp.float32)
    o_ref[...] = jnp.dot(h2.astype(jnp.bfloat16), w3_ref[...],
                         preferred_element_type=jnp.float32) + b3_ref[...]


def chatbot_forward(x, params, seed=0, training=True, use_hw_prng=None):
    """Full MLP forward in one Pallas kernel, tiled over the batch."""
    w1, b1, w2, b2, w3, b3 = params
    batch, in_dim = x.shape
    h1_dim, h2_dim, out_dim = w1.shape[1], w2.shape[1], w3.shape[1]

    in_p = _round_up(in_dim, LANE)
    h1_p = _round_up(h1_dim, LANE)
    h2_p = _round_up(h2_dim, LANE)
    out_p = _round_up(out_dim, LANE)

    # Batch tiling: big tiles amortize per-grid-step overhead; mid-size batches
    # are split into 2 tiles so both v7x TensorCores are used.
    if batch > 512:
        tb = 512
    elif batch > 256:
        tb = _round_up((batch + 1) // 2, 8)
    else:
        tb = _round_up(batch, 8)
    batch_p = _round_up(batch, tb)
    grid = (batch_p // tb,)

    # Zero-pad to lane-dense shapes (numerically exact).  Activations and
    # weights go to the MXU as bf16 (f32 accumulation); biases stay f32.
    xp = _pad2(x.astype(jnp.float32), (batch_p, in_p)).astype(jnp.bfloat16)
    w1p = _pad2(w1, (in_p, h1_p)).astype(jnp.bfloat16)
    w2p = _pad2(w2, (h1_p, h2_p)).astype(jnp.bfloat16)
    w3p = _pad2(w3, (h2_p, out_p)).astype(jnp.bfloat16)
    b1p = _pad2(b1, (1, h1_p)).astype(jnp.float32)
    b2p = _pad2(b2, (1, h2_p)).astype(jnp.float32)
    b3p = _pad2(b3, (1, out_p)).astype(jnp.float32)

    call_kwargs = {}
    if jax.default_backend() == "tpu":
        # No vmem_limit override: kernel footprint is a few MiB, leave headroom.
        call_kwargs["compiler_params"] = pltpu.CompilerParams(
            dimension_semantics=("parallel",))

    if use_hw_prng is None:
        use_hw_prng = jax.default_backend() == "tpu"

    if training and not use_hw_prng:
        # Fallback: stream pre-drawn bf16 {0, 2} masks (half the old f32 bytes).
        k1, k2 = jax.random.split(jax.random.PRNGKey(seed))
        m1 = jnp.where(jax.random.bernoulli(k1, 0.5, (batch_p, h1_p)),
                       2.0, 0.0).astype(jnp.bfloat16)
        m2 = jnp.where(jax.random.bernoulli(k2, 0.5, (batch_p, h2_p)),
                       2.0, 0.0).astype(jnp.bfloat16)
        out_padded = pl.pallas_call(
            _mlp_mask_kernel,
            out_shape=jax.ShapeDtypeStruct((batch_p, out_p), jnp.float32),
            grid=grid,
            in_specs=[
                pl.BlockSpec((tb, in_p), lambda i: (i, 0)),      # x (per tile)
                pl.BlockSpec((in_p, h1_p), lambda i: (0, 0)),    # w1 (resident)
                pl.BlockSpec((1, h1_p), lambda i: (0, 0)),       # b1
                pl.BlockSpec((tb, h1_p), lambda i: (i, 0)),      # mask1
                pl.BlockSpec((h1_p, h2_p), lambda i: (0, 0)),    # w2
                pl.BlockSpec((1, h2_p), lambda i: (0, 0)),       # b2
                pl.BlockSpec((tb, h2_p), lambda i: (i, 0)),      # mask2
                pl.BlockSpec((h2_p, out_p), lambda i: (0, 0)),   # w3
                pl.BlockSpec((1, out_p), lambda i: (0, 0)),      # b3
            ],
            out_specs=pl.BlockSpec((tb, out_p), lambda i: (i, 0)),
            **call_kwargs,
        )(xp, w1p, b1p, m1, w2p, b2p, m2, w3p, b3p)
    else:
        # Primary path: dropout randomness generated in-kernel (HW PRNG).
        seeds = jnp.asarray([seed], dtype=jnp.int32)
        grid_spec = pltpu.PrefetchScalarGridSpec(
            num_scalar_prefetch=1,
            grid=grid,
            in_specs=[
                pl.BlockSpec((tb, in_p), lambda i, s: (i, 0)),    # x (per tile)
                pl.BlockSpec((in_p, h1_p), lambda i, s: (0, 0)),  # w1 (resident)
                pl.BlockSpec((1, h1_p), lambda i, s: (0, 0)),     # b1
                pl.BlockSpec((h1_p, h2_p), lambda i, s: (0, 0)),  # w2
                pl.BlockSpec((1, h2_p), lambda i, s: (0, 0)),     # b2
                pl.BlockSpec((h2_p, out_p), lambda i, s: (0, 0)), # w3
                pl.BlockSpec((1, out_p), lambda i, s: (0, 0)),    # b3
            ],
            out_specs=pl.BlockSpec((tb, out_p), lambda i, s: (i, 0)),
        )
        out_padded = pl.pallas_call(
            functools.partial(_mlp_prng_kernel, dropout=training),
            out_shape=jax.ShapeDtypeStruct((batch_p, out_p), jnp.float32),
            grid_spec=grid_spec,
            **call_kwargs,
        )(seeds, xp, w1p, b1p, w2p, b2p, w3p, b3p)

    # Slice padded rows / columns back off (done outside the kernel).
    return out_padded[:batch, :out_dim]


def init_params(key, in_dim, out_dim):
    """nn.Linear-style U(-1/sqrt(fan_in), 1/sqrt(fan_in)) init.

    Weights stored pre-transposed as [in_features, out_features]."""
    dims = [(in_dim, 256), (256, 64), (64, out_dim)]
    keys = jax.random.split(key, 2 * len(dims))
    params = []
    for i, (fan_in, fan_out) in enumerate(dims):
        bound = 1.0 / jnp.sqrt(float(fan_in))
        w = jax.random.uniform(keys[2 * i], (fan_in, fan_out),
                               dtype=jnp.float32, minval=-bound, maxval=bound)
        b = jax.random.uniform(keys[2 * i + 1], (1, fan_out),
                               dtype=jnp.float32, minval=-bound, maxval=bound)
        params += [w, b]
    return tuple(params)


if __name__ == "__main__":
    # Shapes consistent with the module: len(train_x[0])=64 -> in_dim,
    # len(train_y[0])=16 -> num_classes.
    batch, in_dim, out_dim = 8, 64, 16

    root = jax.random.PRNGKey(0)
    k_x, k_p = jax.random.split(root)
    x = jax.random.normal(k_x, (batch, in_dim), dtype=jnp.float32)
    params = init_params(k_p, in_dim, out_dim)

    out = chatbot_forward(x, params, seed=0, training=True)
    out = jax.block_until_ready(out)

    assert out.shape == (batch, out_dim) and out.dtype == jnp.float32
    assert bool(jnp.all(jnp.isfinite(out)))
    print("KERNEL_OK")
</pallas_src>

<mosaic_0001>
module attributes {stable_mosaic.version = 11 : i64} {
  func.func @_mlp_mask_kernel(%arg0: i32, %arg1: memref<8x128xbf16, #tpu.memory_space<vmem>>, %arg2: memref<128x256xbf16, #tpu.memory_space<vmem>>, %arg3: memref<1x256xf32, #tpu.memory_space<vmem>>, %arg4: memref<8x256xbf16, #tpu.memory_space<vmem>>, %arg5: memref<256x128xbf16, #tpu.memory_space<vmem>>, %arg6: memref<1x128xf32, #tpu.memory_space<vmem>>, %arg7: memref<8x128xbf16, #tpu.memory_space<vmem>>, %arg8: memref<128x128xbf16, #tpu.memory_space<vmem>>, %arg9: memref<1x128xf32, #tpu.memory_space<vmem>>, %arg10: memref<8x128xf32, #tpu.memory_space<vmem>>) attributes {dimension_semantics = [#tpu.dimension_semantics<arbitrary>], iteration_bounds = array<i64: 1>, scalar_prefetch = 0 : i64, scratch_operands = 0 : i64, tpu.core_type = #tpu.core_type<tc>, window_params = [{transform_indices = @transform_0, window_bounds = array<i64: 8, 128>}, {pipeline_mode = #tpu.pipeline_mode<synchronous>, transform_indices = @transform_1, window_bounds = array<i64: 128, 256>}, {pipeline_mode = #tpu.pipeline_mode<synchronous>, transform_indices = @transform_2, window_bounds = array<i64: 1, 256>}, {transform_indices = @transform_3, window_bounds = array<i64: 8, 256>}, {pipeline_mode = #tpu.pipeline_mode<synchronous>, transform_indices = @transform_4, window_bounds = array<i64: 256, 128>}, {pipeline_mode = #tpu.pipeline_mode<synchronous>, transform_indices = @transform_5, window_bounds = array<i64: 1, 128>}, {transform_indices = @transform_6, window_bounds = array<i64: 8, 128>}, {pipeline_mode = #tpu.pipeline_mode<synchronous>, transform_indices = @transform_7, window_bounds = array<i64: 128, 128>}, {pipeline_mode = #tpu.pipeline_mode<synchronous>, transform_indices = @transform_8, window_bounds = array<i64: 1, 128>}, {transform_indices = @transform_9, window_bounds = array<i64: 8, 128>}]} {
    %c0 = arith.constant 0 : index
    %c0_0 = arith.constant 0 : index
    %0 = vector.load %arg1[%c0, %c0_0] : memref<8x128xbf16, #tpu.memory_space<vmem>>, vector<8x128xbf16>
    %c0_1 = arith.constant 0 : index
    %c0_2 = arith.constant 0 : index
    %1 = vector.load %arg2[%c0_1, %c0_2] : memref<128x256xbf16, #tpu.memory_space<vmem>>, vector<128x256xbf16>
    %cst = arith.constant dense<0.000000e+00> : vector<8x256xf32>
    %2 = tpu.matmul %0, %1, %cst {dimension_numbers = #tpu.dot_dimension_numbers<[1], [0], [0], [1], [0, 0, 1, 1], [], []>} : vector<8x128xbf16>, vector<128x256xbf16>, vector<8x256xf32> -> vector<8x256xf32>
    %c0_3 = arith.constant 0 : index
    %c0_4 = arith.constant 0 : index
    %3 = vector.load %arg3[%c0_3, %c0_4] : memref<1x256xf32, #tpu.memory_space<vmem>>, vector<1x256xf32>
    %4 = vector.broadcast %3 : vector<1x256xf32> to vector<8x256xf32>
    %5 = arith.addf %2, %4 : vector<8x256xf32>
    %cst_5 = arith.constant 0.000000e+00 : f32
    %6 = vector.broadcast %cst_5 : f32 to vector<8x256xf32>
    %7 = arith.maximumf %5, %6 : vector<8x256xf32>
    %c0_6 = arith.constant 0 : index
    %c0_7 = arith.constant 0 : index
    %8 = vector.load %arg4[%c0_6, %c0_7] : memref<8x256xbf16, #tpu.memory_space<vmem>>, vector<8x256xbf16>
    %9 = arith.extf %8 : vector<8x256xbf16> to vector<8x256xf32>
    %10 = arith.mulf %7, %9 : vector<8x256xf32>
    %11 = arith.truncf %10 : vector<8x256xf32> to vector<8x256xbf16>
    %c0_8 = arith.constant 0 : index
    %c0_9 = arith.constant 0 : index
    %12 = vector.load %arg5[%c0_8, %c0_9] : memref<256x128xbf16, #tpu.memory_space<vmem>>, vector<256x128xbf16>
    %cst_10 = arith.constant dense<0.000000e+00> : vector<8x128xf32>
    %13 = tpu.matmul %11, %12, %cst_10 {dimension_numbers = #tpu.dot_dimension_numbers<[1], [0], [0], [1], [0, 0, 1, 1], [], []>} : vector<8x256xbf16>, vector<256x128xbf16>, vector<8x128xf32> -> vector<8x128xf32>
    %c0_11 = arith.constant 0 : index
    %c0_12 = arith.constant 0 : index
    %14 = vector.load %arg6[%c0_11, %c0_12] : memref<1x128xf32, #tpu.memory_space<vmem>>, vector<1x128xf32>
    %15 = vector.broadcast %14 : vector<1x128xf32> to vector<8x128xf32>
    %16 = arith.addf %13, %15 : vector<8x128xf32>
    %cst_13 = arith.constant 0.000000e+00 : f32
    %17 = vector.broadcast %cst_13 : f32 to vector<8x128xf32>
    %18 = arith.maximumf %16, %17 : vector<8x128xf32>
    %c0_14 = arith.constant 0 : index
    %c0_15 = arith.constant 0 : index
    %19 = vector.load %arg7[%c0_14, %c0_15] : memref<8x128xbf16, #tpu.memory_space<vmem>>, vector<8x128xbf16>
    %20 = arith.extf %19 : vector<8x128xbf16> to vector<8x128xf32>
    %21 = arith.mulf %18, %20 : vector<8x128xf32>
    %22 = arith.truncf %21 : vector<8x128xf32> to vector<8x128xbf16>
    %c0_16 = arith.constant 0 : index
    %c0_17 = arith.constant 0 : index
    %23 = vector.load %arg8[%c0_16, %c0_17] : memref<128x128xbf16, #tpu.memory_space<vmem>>, vector<128x128xbf16>
    %cst_18 = arith.constant dense<0.000000e+00> : vector<8x128xf32>
    %24 = tpu.matmul %22, %23, %cst_18 {dimension_numbers = #tpu.dot_dimension_numbers<[1], [0], [0], [1], [0, 0, 1, 1], [], []>} : vector<8x128xbf16>, vector<128x128xbf16>, vector<8x128xf32> -> vector<8x128xf32>
    %c0_19 = arith.constant 0 : index
    %c0_20 = arith.constant 0 : index
    %25 = vector.load %arg9[%c0_19, %c0_20] : memref<1x128xf32, #tpu.memory_space<vmem>>, vector<1x128xf32>
    %26 = vector.broadcast %25 : vector<1x128xf32> to vector<8x128xf32>
    %27 = arith.addf %24, %26 : vector<8x128xf32>
    %c0_21 = arith.constant 0 : index
    %c0_22 = arith.constant 0 : index
    %28 = vector.load %arg10[%c0_21, %c0_22] : memref<8x128xf32, #tpu.memory_space<vmem>>, vector<8x128xf32>
    tpu.vector_store %arg10[%c0_21, %c0_22], %27 {strides = array<i32>} : memref<8x128xf32, #tpu.memory_space<vmem>>, vector<8x128xf32>,
    return
  }
  func.func @transform_0(%arg0: i32) -> (i32, i32) {
    %c0_i32 = arith.constant 0 : i32
    %c0_i32_0 = arith.constant 0 : i32
    return %arg0, %c0_i32 : i32, i32
  }
  func.func @transform_1(%arg0: i32) -> (i32, i32) {
    %c0_i32 = arith.constant 0 : i32
    %c0_i32_0 = arith.constant 0 : i32
    %c0_i32_1 = arith.constant 0 : i32
    return %c0_i32, %c0_i32_0 : i32, i32
  }
  func.func @transform_2(%arg0: i32) -> (i32, i32) {
    %c0_i32 = arith.constant 0 : i32
    %c0_i32_0 = arith.constant 0 : i32
    %c0_i32_1 = arith.constant 0 : i32
    return %c0_i32, %c0_i32_0 : i32, i32
  }
  func.func @transform_3(%arg0: i32) -> (i32, i32) {
    %c0_i32 = arith.constant 0 : i32
    %c0_i32_0 = arith.constant 0 : i32
    return %arg0, %c0_i32 : i32, i32
  }
  func.func @transform_4(%arg0: i32) -> (i32, i32) {
    %c0_i32 = arith.constant 0 : i32
    %c0_i32_0 = arith.constant 0 : i32
    %c0_i32_1 = arith.constant 0 : i32
    return %c0_i32, %c0_i32_0 : i32, i32
  }
  func.func @transform_5(%arg0: i32) -> (i32, i32) {
    %c0_i32 = arith.constant 0 : i32
    %c0_i32_0 = arith.constant 0 : i32
    %c0_i32_1 = arith.constant 0 : i32
    return %c0_i32, %c0_i32_0 : i32, i32
  }
  func.func @transform_6(%arg0: i32) -> (i32, i32) {
    %c0_i32 = arith.constant 0 : i32
    %c0_i32_0 = arith.constant 0 : i32
    return %arg0, %c0_i32 : i32, i32
  }
  func.func @transform_7(%arg0: i32) -> (i32, i32) {
    %c0_i32 = arith.constant 0 : i32
    %c0_i32_0 = arith.constant 0 : i32
    %c0_i32_1 = arith.constant 0 : i32
    return %c0_i32, %c0_i32_0 : i32, i32
  }
  func.func @transform_8(%arg0: i32) -> (i32, i32) {
    %c0_i32 = arith.constant 0 : i32
    %c0_i32_0 = arith.constant 0 : i32
    %c0_i32_1 = arith.constant 0 : i32
    return %c0_i32, %c0_i32_0 : i32, i32
  }
  func.func @transform_9(%arg0: i32) -> (i32, i32) {
    %c0_i32 = arith.constant 0 : i32
    %c0_i32_0 = arith.constant 0 : i32
    return %arg0, %c0_i32 : i32, i32
  }
}

</mosaic_0001>

<bundles_post_ra>
// kernel: tpu_custom_call.1
= control target key start
LH: loop header
LB: loop body
LE: loop exit
PB: predicated region body
PF: predicated region fallthrough
CT: control target
= control target key end

     0   :  { %14 = vsyncpa [#allocation3], 0  ;;  %s963_s0 = inlined_call_operand.hbm [shape: bf16[8,128], index: 0, kind: input, shape index: {}]   ;;  %s964_s1 = inlined_call_operand.hbm [shape: bf16[128,256], index: 1, kind: input, shape index: {}]   ;;  %s965_s2 = inlined_call_operand.vmem [shape: f32[1,256], index: 2, kind: input, shape index: {}]   ;;  %s966_s3 = inlined_call_operand.vmem [shape: bf16[8,256], index: 3, kind: input, shape index: {}]   ;;  %s967_s4 = inlined_call_operand.hbm [shape: bf16[256,128], index: 4, kind: input, shape index: {}]   ;;  %s968_s5 = inlined_call_operand.vmem [shape: f32[1,128], index: 5, kind: input, shape index: {}]   ;;  %s969_s6 = inlined_call_operand.vmem [shape: bf16[8,128], index: 6, kind: input, shape index: {}]   ;;  %s970_s7 = inlined_call_operand.hbm [shape: bf16[128,128], index: 7, kind: input, shape index: {}]   ;;  %s971_s8 = inlined_call_operand.vmem [shape: f32[1,128], index: 8, kind: input, shape index: {}]   ;;  %s972_s9 = inlined_call_operand.hbm [shape: f32[8,128], index: 9, kind: output, shape index: {}]  }
   0x1   :  { %15 = vsyncpa [#allocation6], 0 }
   0x2   :  { %16 = vsyncpa [#allocation9], 0 }
   0x3   :  { %17 = vsyncpa [#allocation4], 0  ;;  %s826_s30 = smov [#allocation5]   ;;  %s708_s13 = scalar_lea.hbm %s964_s1, 2048 }
   0x4   :  { %s33_s10 = sshll.u32 %s826_s30, 4  ;;  %p709_p0 = scmp.ne.s32.totalorder %s964_s1, %s708_s13  ;;  %s34_s10 = int_to_ptr.vmem [resolvable:$true] %s33_s10 }
   0x5   :  { %p712_p1 = scmp.lt.u32.totalorder %s708_s13, %s964_s1 }
   0x7   :  { %p714_p2 = pnand %p712_p1, %p709_p0 }
   0x9   :  { %717 = shalt.err (!%p714_p2)
}
   0xa   :  { %s718_s18 = scalar_lea.vmem %s34_s10, 2048  ;;  %p723_p4 = scmp.lt.s32.totalorder %s34_s10, %s34_s10 }
   0xb   :  { %p719_p3 = scmp.ne.s32.totalorder %s34_s10, %s718_s18  ;;  %p724_p5 = scmp.lt.s32.totalorder %s718_s18, %s718_s18 }
   0xd   :  { %p725_p6 = por %p724_p5, %p723_p4 }
   0xf   :  { %p726_p7 = pnand %p725_p6, %p719_p3 }
  0x11   :  { %729 = shalt.err (!%p726_p7)
}
  0x12   :  { %s827_s19 = smov 128   ;;  %s828_s20 = smov 8  }
  0x13   :  { %39 = dma.hbm_to_vmem [thread:$0]  %s964_s1, 2048, %s34_s10, [#allocation6], %s827_s19, %s827_s19, %s828_s20  }
  0x14   :  { %s829_s23 = smov [#allocation2]   ;;  %s830_s25 = smov [#allocation7]  }
  0x15   :  { %s24_s24 = sshll.u32 %s829_s23, 4  ;;  %s49_s26 = sshll.u32 %s830_s25, 4  ;;  %s25_s24 = int_to_ptr.vmem [resolvable:$true] %s24_s24  ;;  %s50_s26 = int_to_ptr.vmem [resolvable:$true] %s49_s26 }
  0x16   :  { %s730_s29 = scalar_lea.hbm %s963_s0, 64 }
  0x17   :  { %p731_p8 = scmp.ne.s32.totalorder %s963_s0, %s730_s29  ;;  %p734_p9 = scmp.lt.u32.totalorder %s730_s29, %s963_s0 }
  0x19   :  { %p736_p10 = pnand %p734_p9, %p731_p8 }
  0x1b   :  { %739 = shalt.err (!%p736_p10)
}
  0x1c   :  { %s740_s1 = scalar_lea.vmem %s25_s24, 64  ;;  %p745_p12 = scmp.lt.s32.totalorder %s25_s24, %s25_s24 }
  0x1d   :  { %p741_p11 = scmp.ne.s32.totalorder %s25_s24, %s740_s1  ;;  %p746_p13 = scmp.lt.s32.totalorder %s740_s1, %s740_s1 }
  0x1f   :  { %p747_p0 = por %p746_p13, %p745_p12 }
  0x21   :  { %p748_p1 = pnand %p747_p0, %p741_p11 }
  0x23   :  { %751 = shalt.err (!%p748_p1)
}
  0x24   :  { %27 = dma.hbm_to_vmem [thread:$0]  %s963_s0, 64, %s25_s24, [#allocation3]  }
  0x25   :  { %s752_s17 = scalar_lea.hbm %s967_s4, 2048 }
  0x26   :  { %p753_p2 = scmp.ne.s32.totalorder %s967_s4, %s752_s17  ;;  %p756_p3 = scmp.lt.u32.totalorder %s752_s17, %s967_s4 }
  0x28   :  { %p758_p4 = pnand %p756_p3, %p753_p2 }
  0x2a   :  { %761 = shalt.err (!%p758_p4)
}
  0x2b   :  { %s762_s22 = scalar_lea.vmem %s50_s26, 2048  ;;  %p767_p6 = scmp.lt.s32.totalorder %s50_s26, %s50_s26 }
  0x2c   :  { %p763_p5 = scmp.ne.s32.totalorder %s50_s26, %s762_s22  ;;  %p768_p7 = scmp.lt.s32.totalorder %s762_s22, %s762_s22 }
  0x2e   :  { %p769_p8 = por %p768_p7, %p767_p6 }
  0x30   :  { %p770_p9 = pnand %p769_p8, %p763_p5 }
  0x32   :  { %773 = shalt.err (!%p770_p9)
}
  0x33   :  { %s831_s0 = smov 64   ;;  %s832_s23 = smov 4  }
  0x34   :  { %55 = dma.hbm_to_vmem [thread:$0]  %s967_s4, 2048, %s50_s26, [#allocation6], %s831_s0, %s831_s0, %s832_s23  }
  0x35   :  { %s833_s27 = smov [#allocation8]   ;;  %s774_s11 = scalar_lea.hbm %s970_s7, 1024 }
  0x36   :  { %s65_s28 = sshll.u32 %s833_s27, 4  ;;  %p775_p10 = scmp.ne.s32.totalorder %s970_s7, %s774_s11  ;;  %s66_s28 = int_to_ptr.vmem [resolvable:$true] %s65_s28 }
  0x37   :  { %p778_p11 = scmp.lt.u32.totalorder %s774_s11, %s970_s7 }
  0x39   :  { %p780_p12 = pnand %p778_p11, %p775_p10 }
  0x3b   :  { %783 = shalt.err (!%p780_p12)
}
  0x3c   :  { %s784_s14 = scalar_lea.vmem %s66_s28, 1024  ;;  %p789_p0 = scmp.lt.s32.totalorder %s66_s28, %s66_s28 }
  0x3d   :  { %p785_p13 = scmp.ne.s32.totalorder %s66_s28, %s784_s14  ;;  %p790_p1 = scmp.lt.s32.totalorder %s784_s14, %s784_s14 }
  0x3f   :  { %p791_p2 = por %p790_p1, %p789_p0 }
  0x41   :  { %p792_p3 = pnand %p791_p2, %p785_p13 }
  0x43   :  { %795 = shalt.err (!%p792_p3)
}
  0x44   :  { %71 = dma.hbm_to_vmem [thread:$0]  %s970_s7, 1024, %s66_s28, [#allocation9], %s831_s0, %s831_s0, %s832_s23  }
  0x45   :  { %818 = dma.done.wait [#allocation3], 64  }
  0x46   :  { %819 = vsyncadd [#allocation3], 4294967232 }
  0x47   :  { %820 = dma.done.wait [#allocation6], 4096  }
  0x48   :  { %821 = vsyncadd [#allocation6], 4294963200 }
  0x49   :  { %822 = dma.done.wait [#allocation9], 1024  }
  0x4a   :  { %823 = vsyncadd [#allocation9], 4294966272  ;;  %v834_v0 = vmov 0   ;;  %v660_v1 = vld [vmem:[#allocation5 + $0x4] ss:$8 sps:$4 sm:$0xff]   ;;  %v688_v15 = vld [vmem:[#allocation7 + $0x50] sm:$0xff]   ;;  %v106_v40 = vlaneseq }
  0x4b   :  { %228 = vmatprep.mubr.bf16.mxu0 %v834_v0  ;;  %v662_v2 = vld [vmem:[#allocation5] ss:$8 sps:$4 sm:$0xff]   ;;  %196 = vmatprep.subr.bf16.mxu0 %v660_v1  ;;  %v663_v3 = vld [vmem:[#allocation5 + $0x14] ss:$8 sps:$4 sm:$0xff]   ;;  %v665_v4 = vld [vmem:[#allocation5 + $0x10] ss:$8 sps:$4 sm:$0xff]  }
  0x4c   :  { %197 = vmatpush1.bf16.msra.mxu0 %v662_v2  ;;  %v666_v5 = vld [vmem:[#allocation5 + $0x24] ss:$8 sps:$4 sm:$0xff]   ;;  %v668_v6 = vld [vmem:[#allocation5 + $0x20] ss:$8 sps:$4 sm:$0xff]   ;;  %v669_v7 = vld [vmem:[#allocation5 + $0x34] ss:$8 sps:$4 sm:$0xff]  }
  0x4d   :  { %198 = vmatprep.subr.bf16.mxu0 %v663_v3  ;;  %v671_v8 = vld [vmem:[#allocation5 + $0x30] ss:$8 sps:$4 sm:$0xff]   ;;  %v672_v9 = vld [vmem:[#allocation5 + $0x44] ss:$8 sps:$4 sm:$0xff]   ;;  %v674_v12 = vld [vmem:[#allocation5 + $0x40] ss:$8 sps:$4 sm:$0xff]  }
  0x4e   :  { %v684_v10 = vld [vmem:[#allocation7 + $0x40] sm:$0xff]   ;;  %v686_v13 = vld [vmem:[#allocation7 + $0x48] sm:$0xff]   ;;  %v675_v16 = vld [vmem:[#allocation5 + $0x54] ss:$8 sps:$4 sm:$0xff]   ;;  %v835_v35 = vmov 0.0   ;;  %v107_v41 = vshrl.u32 %v106_v40, 7 }
  0x4f   :  { %v685_v11 = vld [vmem:[#allocation7] sm:$0xff]   ;;  %597 = vmatprep.subr.bf16.mxu1 %v684_v10  ;;  %v687_v14 = vld [vmem:[#allocation7 + $0x8] sm:$0xff]   ;;  %v677_v17 = vld [vmem:[#allocation5 + $0x50] ss:$8 sps:$4 sm:$0xff]   ;;  %vm836_vm0 = vmmov 0   ;;  %s837_s22 = smov [#allocation10]  }
  0x50   :  { %199 = vmatpush1.bf16.msra.mxu0 %v665_v4  ;;  %598 = vmatpush3.bf16.msra.mxu1 %v685_v11  ;;  %v689_v18 = vld [vmem:[#allocation7 + $0x10] sm:$0xff]   ;;  %v690_v19 = vld [vmem:[#allocation7 + $0x58] sm:$0xff]   ;;  %v678_v20 = vld [vmem:[#allocation5 + $0x64] ss:$8 sps:$4 sm:$0xff]   ;;  %v108_v42 = vsub.s32 0, %v107_v41  ;;  %v112_v44 = vsub.s32 1, %v107_v41 }
  0x51   :  { %200 = vmatprep.subr.bf16.mxu0 %v666_v5  ;;  %599 = vmatprep.subr.bf16.mxu1 %v686_v13  ;;  %v680_v21 = vld [vmem:[#allocation5 + $0x60] ss:$8 sps:$4 sm:$0xff]   ;;  %v691_v22 = vld [vmem:[#allocation7 + $0x18] sm:$0xff]   ;;  %v696_v30 = vld [vmem:[#allocation7 + $0x70] sm:$0xff]  }
  0x52   :  { %v681_v23 = vld [vmem:[#allocation5 + $0x74] ss:$8 sps:$4 sm:$0xff]   ;;  %v692_v24 = vld [vmem:[#allocation7 + $0x60] sm:$0xff]   ;;  %v683_v26 = vld [vmem:[#allocation5 + $0x70] ss:$8 sps:$4 sm:$0xff]  }
  0x53   :  { %v693_v25 = vld [vmem:[#allocation7 + $0x20] sm:$0xff]   ;;  %v694_v27 = vld [vmem:[#allocation7 + $0x68] sm:$0xff]   ;;  %v87_v28 = vld [vmem:[#allocation2] sm:$0xf] }
  0x54   :  { %201 = vmatpush1.bf16.msra.mxu0 %v668_v6  ;;  %600 = vmatpush3.bf16.msra.mxu1 %v687_v14  ;;  %v695_v29 = vld [vmem:[#allocation7 + $0x28] sm:$0xff]   ;;  %v697_v31 = vld [vmem:[#allocation7 + $0x30] sm:$0xff]   ;;  %v698_v32 = vld [vmem:[#allocation7 + $0x78] sm:$0xff]  }
  0x55   :  { %202 = vmatprep.subr.bf16.mxu0 %v669_v7  ;;  %601 = vmatprep.subr.bf16.mxu1 %v688_v15  ;;  %v699_v33 = vld [vmem:[#allocation7 + $0x38] sm:$0xff]   ;;  %v700_v34 = vld [vmem:[#allocation8] sm:$0xff]   ;;  %v701_v36 = vld [vmem:[#allocation8 + $0x8] sm:$0xff]  }
  0x56   :  { %v702_v37 = vld [vmem:[#allocation8 + $0x10] sm:$0xff]   ;;  %v703_v38 = vld [vmem:[#allocation8 + $0x18] sm:$0xff]   ;;  %v704_v39 = vld [vmem:[#allocation8 + $0x20] sm:$0xff]  }
  0x57   :  { %v104_v43 = vld [vmem:[%s965_s2] sm:$0x3]  ;;  %v705_v62 = vld [vmem:[#allocation8 + $0x28] sm:$0xff]   ;;  %v707_v0 = vld [vmem:[#allocation8 + $0x38] sm:$0xff]  }
  0x58   :  { %203 = vmatpush1.bf16.msra.mxu0 %v671_v8  ;;  %602 = vmatpush3.bf16.msra.mxu1 %v689_v18  ;;  %v109_v45 = vrot.slane %v104_v43, %v108_v42  ;;  %v239_v46 = vld [vmem:[%s966_s3] sm:$0xff]  ;;  %v113_v47 = vrot.slane %v104_v43, %v112_v44 }
  0x59   :  { %204 = vmatprep.subr.bf16.mxu0 %v672_v9  ;;  %603 = vmatprep.subr.bf16.mxu1 %v690_v19  ;;  %v240_v50 = vunpack.c.l.bf16 %v239_v46  ;;  %v241_v54 = vunpack.c.h.bf16 %v239_v46  ;;  %v706_v63 = vld [vmem:[#allocation8 + $0x30] sm:$0xff]  }
  0x5a   :  { %v571_v2 = vld [vmem:[%s968_s5] ss:$0 sm:$0xff]  ;;  %s544_s5 = sshll.u32 %s837_s22, 4  ;;  %s545_s5 = int_to_ptr.vmem [resolvable:$true] %s544_s5 }
  0x5b   :  { %v422_v4 = vld [vmem:[%s969_s6] sm:$0xf]  ;;  %s796_s6 = scalar_lea.vmem %s545_s5, 128  ;;  %p801_p5 = scmp.lt.s32.totalorder %s545_s5, %s545_s5 }
  0x5c   :  { %205 = vmatpush1.bf16.msra.mxu0 %v674_v12  ;;  %604 = vmatpush3.bf16.msra.mxu1 %v691_v22  ;;  %v423_v9 = vunpack.c.l.bf16 %v422_v4  ;;  %v588_v13 = vld [vmem:[%s971_s8] ss:$0 sm:$0xff]  ;;  %p797_p4 = scmp.ne.s32.totalorder %s545_s5, %s796_s6  ;;  %p802_p6 = scmp.lt.s32.totalorder %s796_s6, %s796_s6 }
  0x5d   :  { %206 = vmatprep.subr.bf16.mxu0 %v675_v16  ;;  %605 = vmatprep.subr.bf16.mxu1 %v692_v24 }
  0x5e   :  { %p803_p7 = por %p802_p6, %p801_p5 }
  0x60   :  { %207 = vmatpush1.bf16.msra.mxu0 %v677_v17  ;;  %606 = vmatpush3.bf16.msra.mxu1 %v693_v25  ;;  %p804_p8 = pnand %p803_p7, %p797_p4 }
  0x61   :  { %208 = vmatprep.subr.bf16.mxu0 %v678_v20  ;;  %607 = vmatprep.subr.bf16.mxu1 %v694_v27 }
  0x64   :  { %209 = vmatpush1.bf16.msra.mxu0 %v680_v21  ;;  %608 = vmatpush3.bf16.msra.mxu1 %v695_v29 }
  0x65   :  { %210 = vmatprep.subr.bf16.mxu0 %v681_v23  ;;  %609 = vmatprep.subr.bf16.mxu1 %v696_v30 }
  0x68   :  { %211 = vmatpush1.bf16.msra.mxu0 %v683_v26  ;;  %610 = vmatpush3.bf16.msra.mxu1 %v697_v31 }
  0x69   :  { %611 = vmatprep.subr.bf16.mxu1 %v698_v32  ;;  %628 = vmatprep.subr.bf16.mxu0 %v835_v35 }
  0x6b   :  { %229 = vmatmul.mubr.bf16.vlgmr.msra.gmra.mrb[0].mxu0 %v87_v28 }
  0x6c   :  { %612 = vmatpush3.bf16.msra.mxu1 %v699_v33  ;;  %629 = vmatpush3.bf16.msra.mxu0 %v700_v34 }
  0x6d   :  { %630 = vmatprep.subr.bf16.mxu0 %v835_v35  ;;  %644 = vmatprep.mubr.msk.bf16.mxu0 %vm836_vm0, %v835_v35 }
  0x70   :  { %631 = vmatpush3.bf16.msra.mxu0 %v701_v36 }
  0x71   :  { %632 = vmatprep.subr.bf16.mxu0 %v835_v35 }
  0x74   :  { %633 = vmatpush3.bf16.msra.mxu0 %v702_v37 }
  0x75   :  { %634 = vmatprep.subr.bf16.mxu0 %v835_v35 }
  0x78   :  { %635 = vmatpush3.bf16.msra.mxu0 %v703_v38 }
  0x79   :  { %636 = vmatprep.subr.bf16.mxu0 %v835_v35 }
  0x7c   :  { %637 = vmatpush3.bf16.msra.mxu0 %v704_v39 }
  0x7d   :  { %638 = vmatprep.subr.bf16.mxu0 %v835_v35 }
  0x80   :  { %639 = vmatpush3.bf16.msra.mxu0 %v705_v62 }
  0x81   :  { %640 = vmatprep.subr.bf16.mxu0 %v835_v35 }
  0x84   :  { %641 = vmatpush3.bf16.msra.mxu0 %v706_v63 }
  0x85   :  { %642 = vmatprep.subr.bf16.mxu0 %v835_v35 }
  0x88   :  { %643 = vmatpush3.bf16.msra.mxu0 %v707_v0 }
 0x13e   :  { %v230_v48 = vpop.f32.mrb[0].mxu0 }
 0x13f   :  { %v231_v49 = vadd.f32 %v230_v48, %v109_v45  ;;  %v232_v51 = vpop.f32.mrb[1].mxu0 }
 0x140   :  { %v233_v52 = vadd.f32 %v232_v51, %v113_v47  ;;  %v234_v53 = vpop.f32.mrb[2].mxu0 }
 0x141   :  { %v237_v55 = vmax.f32 %v231_v49, 0.0  ;;  %v235_v56 = vpop.f32.mrb[3].mxu0 }
 0x142   :  { %v238_v57 = vmax.f32 %v233_v52, 0.0 }
 0x143   :  { %v242_v58 = vmul.f32 %v240_v50, %v237_v55 }
 0x144   :  { %v243_v59 = vmul.f32 %v241_v54, %v238_v57 }
 0x145   :  { %v244_v61 = vpack.c.bf16 %v242_v58, %v242_v58 }
 0x146   :  { %v245_v60 = vpack.c.bf16 %v243_v59, %v243_v59 }
 0x148   :  { %413 = vmatprep.mubr.bf16.mxu1 %v245_v60 }
 0x149   :  { %414 = vmatmul.mubr.bf16.vlgmr.msra.gmra.mrb[0].mxu1 %v244_v61 }
 0x21c   :  { %v613_v1 = vpop.f32.mrb[0].mxu1 }
 0x21d   :  { %v614_v3 = vpop.f32.mrb[1].mxu1 }
 0x21e   :  { %v615_v5 = vadd.f32 %v614_v3, %v613_v1  ;;  %v616_v6 = vpop.f32.mrb[2].mxu1 }
 0x21f   :  { %v617_v7 = vpop.f32.mrb[3].mxu1 }
 0x220   :  { %v416_v8 = vadd.f32 %v615_v5, %v571_v2 }
 0x222   :  { %v421_v10 = vmax.f32 %v416_v8, 0.0 }
 0x224   :  { %v424_v11 = vmul.f32 %v423_v9, %v421_v10 }
 0x226   :  { %v425_v12 = vpack.c.bf16 %v424_v11, %v424_v11 }
 0x228   :  { %645 = vmatmul.mubr.bf16.vlgmr.msra.gmra.mrb[4].mxu0 %v425_v12 }
 0x2fb   :  { %v531_v14 = vpop.f32.mrb[4].mxu0 }
 0x2fc   :  { %v532_v15 = vadd.f32 %v588_v13, %v531_v14  ;;  %v646_v16 = vpop.f32.mrb[5].mxu0 }
 0x2fd   :  { %v534_v17 = vpop.f32.mrb[6].mxu0 }
 0x2fe   :  { %537 = vst [vmem:[#allocation10] sm:$0xff] %v532_v15  ;;  %v647_v18 = vpop.f32.mrb[7].mxu0 }
 0x2ff   :  { %807 = shalt.err (!%p804_p8)
}
 0x300   :  { %s808_s8 = scalar_lea.hbm %s972_s9, 128 }
 0x301   :  { %p809_p9 = scmp.ne.s32.totalorder %s972_s9, %s808_s8  ;;  %p812_p10 = scmp.lt.u32.totalorder %s808_s8, %s972_s9 }
 0x303   :  { %p814_p11 = pnand %p812_p10, %p809_p9 }
 0x305   :  { %817 = shalt.err (!%p814_p11)
}
 0x306   :  { %547 = dma.vmem_to_hbm [thread:$0]  %s545_s5, 128, %s972_s9, [#allocation4]  }
 0x307   :  { %824 = dma.done.wait [#allocation4], 128  }
 0x308   :  { %825 = vsyncadd [#allocation4], 4294967168 }
 0x309   :  { %551 = vsyncpa [#allocation3], 1 }
 0x30a   :  { %552 = vsyncpa [#allocation6], 1 }
 0x30b   :  { %553 = vsyncpa [#allocation9], 1 }
 0x30c   :  { %554 = vsyncpa [#allocation4], 1 }

</bundles_post_ra>
